<compile_context>
chip_gen: v6e
topology: v6e:2x2x1
jax: 0.10.0
libtpu: 0.0.40
codegen_flags: <defaults>
</compile_context>

<pallas_src>
import jax
import jax.numpy as jnp
from jax.experimental import pallas as pl
from jax.experimental.pallas import tpu as pltpu

_LANES = 128


def _round_up(x, m):
    return (x + m - 1) // m * m


def _cdiv(a, b):
    return -(-a // b)


def _tpu_vmem_bytes():
    """Physical VMEM capacity (bytes); conservative (v7x-sized) fallback."""
    try:
        info = pltpu.get_tpu_info()
        for attr in ("vmem_capacity_bytes", "vmem_bytes", "vmem_size_bytes"):
            v = getattr(info, attr, None)
            if isinstance(v, int) and v > 0:
                return v
    except Exception:
        pass
    return 64 * 1024 * 1024


def _num_tensorcores():
    """TensorCores per chip; 1 if it cannot be determined (=> no forced split)."""
    try:
        info = pltpu.get_tpu_info()
        for attr in ("num_tensorcores", "tensorcore_count", "num_cores",
                     "core_count"):
            v = getattr(info, attr, None)
            if isinstance(v, int) and v > 0:
                return v
    except Exception:
        pass
    return 1


def _maybe_pad_dim(n, threshold):
    """Pad `n` to a multiple of 128 only if the pad fraction is small."""
    n_p = _round_up(n, _LANES)
    if n_p == n:
        return n
    if (n_p - n) / float(n) <= threshold:
        return n_p
    # Heavy padding (e.g. 64 -> 128) would double HBM traffic in a mem-bound
    # kernel; a full-extent (non-lane-aligned) block is cheaper overall.
    return n


# ----------------------------------------------------------------------------
# Kernel
# ----------------------------------------------------------------------------
def autoencoder_kernel(w_ref, w1_ref, b1_ref, w2_ref, b2_ref, out_ref):
    # w_ref  : (tm, size)        input batch tile
    # w1_ref : (size, hid_p)     hidden weight, pre-transposed (zero-padded)
    # b1_ref : (1, hid_p)        hidden bias, f32
    # w2_ref : (hid_p, size_p)   output weight, pre-transposed (zero-padded)
    # b2_ref : (1, size_p)       output bias, f32
    # out_ref: (tm, size_p)      output tile
    x = w_ref[...]
    if x.dtype != w1_ref.dtype:
        x = x.astype(w1_ref.dtype)
    h = jnp.dot(x, w1_ref[...], preferred_element_type=jnp.float32)
    h = jnp.maximum(h + b1_ref[...], 0.0)          # bias + ReLU in f32 (VPU)
    if h.dtype != w2_ref.dtype:
        h = h.astype(w2_ref.dtype)
    y = jnp.dot(h, w2_ref[...], preferred_element_type=jnp.float32)
    out_ref[...] = (y + b2_ref[...]).astype(out_ref.dtype)


# ----------------------------------------------------------------------------
# One-time parameter preparation (hoisted out of the per-call forward path)
# ----------------------------------------------------------------------------
def prepare_autoencoder_params(hidden_w, hidden_b, output_w, output_b, *,
                               compute_dtype=jnp.float32, pad_threshold=0.125):
    """Transpose / pad / cast the nn.Linear parameters once.

    hidden_w : (n_hidden, size)   PyTorch nn.Linear weight layout (out, in)
    hidden_b : (n_hidden,)
    output_w : (size, n_hidden)
    output_b : (size,)
    """
    n_hidden, size = hidden_w.shape
    assert output_w.shape == (size, n_hidden)
    assert hidden_b.shape == (n_hidden,)
    assert output_b.shape == (size,)

    hid_p = _maybe_pad_dim(n_hidden, pad_threshold)
    size_p = _maybe_pad_dim(size, pad_threshold)

    def _pad_to(mat, rows, cols, dtype):
        mat = mat.astype(dtype)
        if mat.shape == (rows, cols):
            return mat
        return jnp.zeros((rows, cols), dtype).at[:mat.shape[0],
                                                 :mat.shape[1]].set(mat)

    w1_t = _pad_to(hidden_w.T, size, hid_p, compute_dtype)     # (size, hid_p)
    w2_t = _pad_to(output_w.T, hid_p, size_p, compute_dtype)   # (hid_p, size_p)
    b1 = _pad_to(hidden_b.astype(jnp.float32)[None, :], 1, hid_p, jnp.float32)
    b2 = _pad_to(output_b.astype(jnp.float32)[None, :], 1, size_p, jnp.float32)

    return {"w1_t": w1_t, "b1": b1, "w2_t": w2_t, "b2": b2,
            "size": size, "n_hidden": n_hidden,
            "size_p": size_p, "hid_p": hid_p}


# ----------------------------------------------------------------------------
# Batch-tile picker (VMEM-budgeted, generation-aware)
# ----------------------------------------------------------------------------
def _pick_tm(B, size, size_p, hid_p, in_dtype, out_dtype, compute_dtype,
             vmem_limit_bytes, resident_weight_bytes):
    granule = 16 if jnp.dtype(compute_dtype).itemsize < 4 else 8
    in_isz = jnp.dtype(in_dtype).itemsize
    out_isz = jnp.dtype(out_dtype).itemsize
    c_isz = jnp.dtype(compute_dtype).itemsize

    # Per-row VMEM bytes: double-buffered input + output tiles plus in-kernel
    # intermediates (cast copy of x, f32 h, cast copy of h, f32 y).
    per_row = (2 * size * in_isz + 2 * size_p * out_isz
               + 4 * hid_p + 4 * size_p
               + (size * c_isz if c_isz != in_isz else 0)
               + (hid_p * c_isz if c_isz != 4 else 0))

    budget = vmem_limit_bytes - resident_weight_bytes - (2 << 20)
    tm = max(granule, min(budget // max(per_row, 1), 2048))

    b_round = _round_up(B, granule)
    tm = min(tm, b_round)

    # Only force a multi-step split on chips with >=2 TensorCores (v7x); make
    # the step count even so the "parallel" batch axis shards evenly.
    if _num_tensorcores() >= 2 and b_round >= 2 * granule:
        steps = max(2, _cdiv(b_round, tm))
        steps += steps % 2
        tm = min(tm, _round_up(_cdiv(b_round, steps), granule))

    return _round_up(max(tm, granule), granule)


# ----------------------------------------------------------------------------
# Forward
# ----------------------------------------------------------------------------
_BUFFERED_OK = [None]  # cache: does this JAX build accept pipeline_mode=Buffered(1)?


def _const_specs(shapes, use_buffered):
    specs = []
    for shp in shapes:
        if use_buffered:
            specs.append(pl.BlockSpec(shp, lambda i: (0, 0),
                                      pipeline_mode=pl.Buffered(1)))
        else:
            specs.append(pl.BlockSpec(shp, lambda i: (0, 0)))
    return specs


def autoencoder_forward(w, params, *, tm=None):
    """w: (B, size) batch; params: output of prepare_autoencoder_params."""
    w1_t, b1, w2_t, b2 = params["w1_t"], params["b1"], params["w2_t"], params["b2"]
    size, size_p, hid_p = params["size"], params["size_p"], params["hid_p"]
    n_hidden = params["n_hidden"]
    B = w.shape[0]
    assert w.shape == (B, size)

    out_dtype = w.dtype
    compute_dtype = w1_t.dtype
    c_isz = jnp.dtype(compute_dtype).itemsize
    in_isz = jnp.dtype(w.dtype).itemsize
    out_isz = jnp.dtype(out_dtype).itemsize

    # Generation-aware VMEM limit: ~3/4 of physical, capped at 100 MiB.
    capacity = _tpu_vmem_bytes()
    vmem_limit = max(32 << 20, min(capacity * 3 // 4, 100 << 20))

    # Resident weights/biases (budget conservatively for 2 buffers even though
    # Buffered(1) is requested).
    resident = ((w1_t.size + w2_t.size) * c_isz + (b1.size + b2.size) * 4) * 2

    if tm is None:
        tm = _pick_tm(B, size, size_p, hid_p, w.dtype, out_dtype, compute_dtype,
                      vmem_limit, resident)
    grid = (pl.cdiv(B, tm),)  # ragged last tile handled by masked block write

    cost = pl.CostEstimate(
        flops=4 * B * size * n_hidden,                       # two matmuls
        bytes_accessed=(B * size * in_isz                    # input read
                        + B * size_p * out_isz               # output write
                        + (w1_t.size + w2_t.size) * c_isz
                        + (b1.size + b2.size) * 4),
        transcendentals=0,
    )

    def _run(use_buffered):
        const = _const_specs([w1_t.shape, b1.shape, w2_t.shape, b2.shape],
                             use_buffered)
        return pl.pallas_call(
            autoencoder_kernel,
            out_shape=jax.ShapeDtypeStruct((B, size_p), out_dtype),
            grid_spec=pltpu.PrefetchScalarGridSpec(
                num_scalar_prefetch=0,
                grid=grid,
                in_specs=[pl.BlockSpec((tm, size), lambda i: (i, 0))] + const,
                out_specs=pl.BlockSpec((tm, size_p), lambda i: (i, 0)),
            ),
            compiler_params=pltpu.CompilerParams(
                dimension_semantics=("parallel",),
                vmem_limit_bytes=int(vmem_limit),
            ),
            cost_estimate=cost,
        )(w, w1_t, b1, w2_t, b2)

    if _BUFFERED_OK[0] is None:
        try:
            out = _run(True)
            jax.block_until_ready(out)
            _BUFFERED_OK[0] = True
        except Exception:
            _BUFFERED_OK[0] = False
            out = _run(False)
    else:
        out = _run(_BUFFERED_OK[0])

    # Only slice if the output feature dim was actually padded (small-pad case).
    return out[:, :size] if size_p != size else out


if __name__ == "__main__":
    size = 64       # input/output feature dim of the autoencoder
    n_hidden = 32   # hidden dim
    batch = 16

    key = jax.random.PRNGKey(0)
    k_in, k_hw, k_hb, k_ow, k_ob = jax.random.split(key, 5)

    w = jax.random.normal(k_in, (batch, size), jnp.float32)

    # torch.nn.Linear-style init: U(-1/sqrt(fan_in), 1/sqrt(fan_in))
    hb = 1.0 / (size ** 0.5)
    ob = 1.0 / (n_hidden ** 0.5)
    hidden_w = jax.random.uniform(k_hw, (n_hidden, size), jnp.float32, -hb, hb)
    hidden_b = jax.random.uniform(k_hb, (n_hidden,), jnp.float32, -hb, hb)
    output_w = jax.random.uniform(k_ow, (size, n_hidden), jnp.float32, -ob, ob)
    output_b = jax.random.uniform(k_ob, (size,), jnp.float32, -ob, ob)

    # One-time weight prep (hoisted out of the per-call forward).
    params = prepare_autoencoder_params(hidden_w, hidden_b, output_w, output_b)

    out = autoencoder_forward(w, params)
    out = jax.block_until_ready(out)

    # Plain-JAX reference mirroring the PyTorch forward exactly (f32).
    ref = jnp.maximum(w @ hidden_w.T + hidden_b, 0.0) @ output_w.T + output_b

    assert out.shape == (batch, size)
    max_err = float(jnp.max(jnp.abs(out - ref)))
    assert jnp.allclose(out, ref, atol=5e-3, rtol=5e-3), f"max |err| = {max_err}"

    print("KERNEL_OK")
</pallas_src>

<mosaic_0001>
module attributes {stable_mosaic.version = 11 : i64} {
  func.func @autoencoder_kernel(%arg0: i32, %arg1: memref<16x64xf32, #tpu.memory_space<vmem>>, %arg2: memref<64x32xf32, #tpu.memory_space<vmem>>, %arg3: memref<1x32xf32, #tpu.memory_space<vmem>>, %arg4: memref<32x64xf32, #tpu.memory_space<vmem>>, %arg5: memref<1x64xf32, #tpu.memory_space<vmem>>, %arg6: memref<16x64xf32, #tpu.memory_space<vmem>>) attributes {dimension_semantics = [#tpu.dimension_semantics<parallel>], iteration_bounds = array<i64: 1>, scalar_prefetch = 0 : i64, scratch_operands = 0 : i64, tpu.core_type = #tpu.core_type<tc>, window_params = [{transform_indices = @transform_0, window_bounds = array<i64: 16, 64>}, {pipeline_mode = #tpu.pipeline_mode<synchronous>, transform_indices = @transform_1, window_bounds = array<i64: 64, 32>}, {pipeline_mode = #tpu.pipeline_mode<synchronous>, transform_indices = @transform_2, window_bounds = array<i64: 1, 32>}, {pipeline_mode = #tpu.pipeline_mode<synchronous>, transform_indices = @transform_3, window_bounds = array<i64: 32, 64>}, {pipeline_mode = #tpu.pipeline_mode<synchronous>, transform_indices = @transform_4, window_bounds = array<i64: 1, 64>}, {transform_indices = @transform_5, window_bounds = array<i64: 16, 64>}]} {
    %c0 = arith.constant 0 : index
    %c0_0 = arith.constant 0 : index
    %0 = vector.load %arg1[%c0, %c0_0] : memref<16x64xf32, #tpu.memory_space<vmem>>, vector<16x64xf32>
    %c0_1 = arith.constant 0 : index
    %c0_2 = arith.constant 0 : index
    %1 = vector.load %arg2[%c0_1, %c0_2] : memref<64x32xf32, #tpu.memory_space<vmem>>, vector<64x32xf32>
    %cst = arith.constant dense<0.000000e+00> : vector<16x32xf32>
    %2 = tpu.matmul %0, %1, %cst {dimension_numbers = #tpu.dot_dimension_numbers<[1], [0], [0], [1], [0, 0, 1, 1], [], []>} : vector<16x64xf32>, vector<64x32xf32>, vector<16x32xf32> -> vector<16x32xf32>
    %c0_3 = arith.constant 0 : index
    %c0_4 = arith.constant 0 : index
    %3 = vector.load %arg3[%c0_3, %c0_4] : memref<1x32xf32, #tpu.memory_space<vmem>>, vector<1x32xf32>
    %4 = vector.broadcast %3 : vector<1x32xf32> to vector<16x32xf32>
    %5 = arith.addf %2, %4 : vector<16x32xf32>
    %cst_5 = arith.constant 0.000000e+00 : f32
    %6 = vector.broadcast %cst_5 : f32 to vector<16x32xf32>
    %7 = arith.maximumf %5, %6 : vector<16x32xf32>
    %c0_6 = arith.constant 0 : index
    %c0_7 = arith.constant 0 : index
    %8 = vector.load %arg4[%c0_6, %c0_7] : memref<32x64xf32, #tpu.memory_space<vmem>>, vector<32x64xf32>
    %cst_8 = arith.constant dense<0.000000e+00> : vector<16x64xf32>
    %9 = tpu.matmul %7, %8, %cst_8 {dimension_numbers = #tpu.dot_dimension_numbers<[1], [0], [0], [1], [0, 0, 1, 1], [], []>} : vector<16x32xf32>, vector<32x64xf32>, vector<16x64xf32> -> vector<16x64xf32>
    %c0_9 = arith.constant 0 : index
    %c0_10 = arith.constant 0 : index
    %10 = vector.load %arg5[%c0_9, %c0_10] : memref<1x64xf32, #tpu.memory_space<vmem>>, vector<1x64xf32>
    %11 = vector.broadcast %10 : vector<1x64xf32> to vector<16x64xf32>
    %12 = arith.addf %9, %11 : vector<16x64xf32>
    %c0_11 = arith.constant 0 : index
    %c0_12 = arith.constant 0 : index
    %13 = vector.load %arg6[%c0_11, %c0_12] : memref<16x64xf32, #tpu.memory_space<vmem>>, vector<16x64xf32>
    tpu.vector_store %arg6[%c0_11, %c0_12], %12 {strides = array<i32>} : memref<16x64xf32, #tpu.memory_space<vmem>>, vector<16x64xf32>,
    return
  }
  func.func @transform_0(%arg0: i32) -> (i32, i32) {
    %c0_i32 = arith.constant 0 : i32
    %c0_i32_0 = arith.constant 0 : i32
    return %arg0, %c0_i32 : i32, i32
  }
  func.func @transform_1(%arg0: i32) -> (i32, i32) {
    %c0_i32 = arith.constant 0 : i32
    %c0_i32_0 = arith.constant 0 : i32
    %c0_i32_1 = arith.constant 0 : i32
    return %c0_i32, %c0_i32_0 : i32, i32
  }
  func.func @transform_2(%arg0: i32) -> (i32, i32) {
    %c0_i32 = arith.constant 0 : i32
    %c0_i32_0 = arith.constant 0 : i32
    %c0_i32_1 = arith.constant 0 : i32
    return %c0_i32, %c0_i32_0 : i32, i32
  }
  func.func @transform_3(%arg0: i32) -> (i32, i32) {
    %c0_i32 = arith.constant 0 : i32
    %c0_i32_0 = arith.constant 0 : i32
    %c0_i32_1 = arith.constant 0 : i32
    return %c0_i32, %c0_i32_0 : i32, i32
  }
  func.func @transform_4(%arg0: i32) -> (i32, i32) {
    %c0_i32 = arith.constant 0 : i32
    %c0_i32_0 = arith.constant 0 : i32
    %c0_i32_1 = arith.constant 0 : i32
    return %c0_i32, %c0_i32_0 : i32, i32
  }
  func.func @transform_5(%arg0: i32) -> (i32, i32) {
    %c0_i32 = arith.constant 0 : i32
    %c0_i32_0 = arith.constant 0 : i32
    return %arg0, %c0_i32 : i32, i32
  }
}

module attributes {stable_mosaic.version = 11 : i64} {
  func.func @autoencoder_kernel(%arg0: i32, %arg1: memref<16x64xf32, #tpu.memory_space<vmem>>, %arg2: memref<64x32xf32, #tpu.memory_space<vmem>>, %arg3: memref<1x32xf32, #tpu.memory_space<vmem>>, %arg4: memref<32x64xf32, #tpu.memory_space<vmem>>, %arg5: memref<1x64xf32, #tpu.memory_space<vmem>>, %arg6: memref<16x64xf32, #tpu.memory_space<vmem>>) attributes {dimension_semantics = [#tpu.dimension_semantics<parallel>], iteration_bounds = array<i64: 1>, scalar_prefetch = 0 : i64, scratch_operands = 0 : i64, tpu.core_type = #tpu.core_type<tc>, window_params = [{transform_indices = @transform_0, window_bounds = array<i64: 16, 64>}, {pipeline_mode = #tpu.pipeline_mode<synchronous>, transform_indices = @transform_1, window_bounds = array<i64: 64, 32>}, {pipeline_mode = #tpu.pipeline_mode<synchronous>, transform_indices = @transform_2, window_bounds = array<i64: 1, 32>}, {pipeline_mode = #tpu.pipeline_mode<synchronous>, transform_indices = @transform_3, window_bounds = array<i64: 32, 64>}, {pipeline_mode = #tpu.pipeline_mode<synchronous>, transform_indices = @transform_4, window_bounds = array<i64: 1, 64>}, {transform_indices = @transform_5, window_bounds = array<i64: 16, 64>}]} {
    %c0 = arith.constant 0 : index
    %c0_0 = arith.constant 0 : index
    %0 = vector.load %arg1[%c0, %c0_0] : memref<16x64xf32, #tpu.memory_space<vmem>>, vector<16x64xf32>
    %c0_1 = arith.constant 0 : index
    %c0_2 = arith.constant 0 : index
    %1 = vector.load %arg2[%c0_1, %c0_2] : memref<64x32xf32, #tpu.memory_space<vmem>>, vector<64x32xf32>
    %cst = arith.constant dense<0.000000e+00> : vector<16x32xf32>
    %2 = tpu.matmul %0, %1, %cst {dimension_numbers = #tpu.dot_dimension_numbers<[1], [0], [0], [1], [0, 0, 1, 1], [], []>} : vector<16x64xf32>, vector<64x32xf32>, vector<16x32xf32> -> vector<16x32xf32>
    %c0_3 = arith.constant 0 : index
    %c0_4 = arith.constant 0 : index
    %3 = vector.load %arg3[%c0_3, %c0_4] : memref<1x32xf32, #tpu.memory_space<vmem>>, vector<1x32xf32>
    %4 = vector.broadcast %3 : vector<1x32xf32> to vector<16x32xf32>
    %5 = arith.addf %2, %4 : vector<16x32xf32>
    %cst_5 = arith.constant 0.000000e+00 : f32
    %6 = vector.broadcast %cst_5 : f32 to vector<16x32xf32>
    %7 = arith.maximumf %5, %6 : vector<16x32xf32>
    %c0_6 = arith.constant 0 : index
    %c0_7 = arith.constant 0 : index
    %8 = vector.load %arg4[%c0_6, %c0_7] : memref<32x64xf32, #tpu.memory_space<vmem>>, vector<32x64xf32>
    %cst_8 = arith.constant dense<0.000000e+00> : vector<16x64xf32>
    %9 = tpu.matmul %7, %8, %cst_8 {dimension_numbers = #tpu.dot_dimension_numbers<[1], [0], [0], [1], [0, 0, 1, 1], [], []>} : vector<16x32xf32>, vector<32x64xf32>, vector<16x64xf32> -> vector<16x64xf32>
    %c0_9 = arith.constant 0 : index
    %c0_10 = arith.constant 0 : index
    %10 = vector.load %arg5[%c0_9, %c0_10] : memref<1x64xf32, #tpu.memory_space<vmem>>, vector<1x64xf32>
    %11 = vector.broadcast %10 : vector<1x64xf32> to vector<16x64xf32>
    %12 = arith.addf %9, %11 : vector<16x64xf32>
    %c0_11 = arith.constant 0 : index
    %c0_12 = arith.constant 0 : index
    %13 = vector.load %arg6[%c0_11, %c0_12] : memref<16x64xf32, #tpu.memory_space<vmem>>, vector<16x64xf32>
    tpu.vector_store %arg6[%c0_11, %c0_12], %12 {strides = array<i32>} : memref<16x64xf32, #tpu.memory_space<vmem>>, vector<16x64xf32>,
    return
  }
  func.func @transform_0(%arg0: i32) -> (i32, i32) {
    %c0_i32 = arith.constant 0 : i32
    %c0_i32_0 = arith.constant 0 : i32
    return %arg0, %c0_i32 : i32, i32
  }
  func.func @transform_1(%arg0: i32) -> (i32, i32) {
    %c0_i32 = arith.constant 0 : i32
    %c0_i32_0 = arith.constant 0 : i32
    %c0_i32_1 = arith.constant 0 : i32
    return %c0_i32, %c0_i32_0 : i32, i32
  }
  func.func @transform_2(%arg0: i32) -> (i32, i32) {
    %c0_i32 = arith.constant 0 : i32
    %c0_i32_0 = arith.constant 0 : i32
    %c0_i32_1 = arith.constant 0 : i32
    return %c0_i32, %c0_i32_0 : i32, i32
  }
  func.func @transform_3(%arg0: i32) -> (i32, i32) {
    %c0_i32 = arith.constant 0 : i32
    %c0_i32_0 = arith.constant 0 : i32
    %c0_i32_1 = arith.constant 0 : i32
    return %c0_i32, %c0_i32_0 : i32, i32
  }
  func.func @transform_4(%arg0: i32) -> (i32, i32) {
    %c0_i32 = arith.constant 0 : i32
    %c0_i32_0 = arith.constant 0 : i32
    %c0_i32_1 = arith.constant 0 : i32
    return %c0_i32, %c0_i32_0 : i32, i32
  }
  func.func @transform_5(%arg0: i32) -> (i32, i32) {
    %c0_i32 = arith.constant 0 : i32
    %c0_i32_0 = arith.constant 0 : i32
    return %arg0, %c0_i32 : i32, i32
  }
}

</mosaic_0001>

<bundles_post_ra>
// kernel: tpu_custom_call.1
= control target key start
LH: loop header
LB: loop body
LE: loop exit
PB: predicated region body
PF: predicated region fallthrough
CT: control target
= control target key end

     0   :  { %vm38_vm0 = vcmask 523264   ;;  %s398_s0 = inlined_call_operand.vmem [shape: f32[16,64], index: 0, kind: input, shape index: {}]   ;;  %s399_s1 = inlined_call_operand.vmem [shape: f32[64,32], index: 1, kind: input, shape index: {}]   ;;  %s400_s2 = inlined_call_operand.vmem [shape: f32[1,32], index: 2, kind: input, shape index: {}]   ;;  %s401_s3 = inlined_call_operand.vmem [shape: f32[32,64], index: 3, kind: input, shape index: {}]   ;;  %s402_s4 = inlined_call_operand.vmem [shape: f32[1,64], index: 4, kind: input, shape index: {}]   ;;  %s403_s5 = inlined_call_operand.hbm [shape: f32[16,64], index: 5, kind: output, shape index: {}]  }
   0x1   :  { %v30_v0 = vld [vmem:[%s399_s1 + $0x38] sm:$0xff]  ;;  %v29_v1 = vld [vmem:[%s399_s1 + $0x30] sm:$0xff]  ;;  %v28_v2 = vld [vmem:[%s399_s1 + $0x28] sm:$0xff] }
   0x2   :  { %255 = vmatprep.subr.mxu0 %v30_v0  ;;  %v21_v3 = vld [vmem:[%s398_s0] sm:$0xff] }
   0x3   :  { %256 = vmatpush3.msra.mxu0 %v30_v0  ;;  %271 = vmatprep.mubr.msk.f32.mxu0 %vm38_vm0, %v21_v3 }
   0x4   :  { %257 = vmatprep.subr.mxu0 %v29_v1 }
   0x5   :  { %10 = vsyncpa [#allocation3], 0  ;;  %258 = vmatpush3.msra.mxu0 %v29_v1  ;;  %v27_v4 = vld [vmem:[%s399_s1 + $0x20] sm:$0xff]  ;;  %v26_v5 = vld [vmem:[%s399_s1 + $0x18] sm:$0xff]  ;;  %vm133_vm1 = vcmask 261120  }
   0x6   :  { %259 = vmatprep.subr.mxu0 %v28_v2  ;;  %v25_v6 = vld [vmem:[%s399_s1 + $0x10] sm:$0xff]  ;;  %v24_v7 = vld [vmem:[%s399_s1 + $0x8] sm:$0xff]  ;;  %v23_v8 = vld [vmem:[%s399_s1] sm:$0xff] }
   0x7   :  { %260 = vmatpush3.msra.mxu0 %v28_v2  ;;  %v22_v9 = vld [vmem:[%s398_s0 + $0x8] sm:$0xff]  ;;  %v125_v10 = vld [vmem:[%s401_s3 + $0x18] sm:$0xff]  ;;  %v124_v11 = vld [vmem:[%s401_s3 + $0x10] sm:$0xff] }
   0x8   :  { %261 = vmatprep.subr.mxu0 %v27_v4  ;;  %274 = vmatprep.subr.mxu1 %v125_v10  ;;  %v123_v12 = vld [vmem:[%s401_s3 + $0x8] sm:$0xff]  ;;  %v122_v13 = vld [vmem:[%s401_s3] sm:$0xff]  ;;  %s310_s3 = smov [#allocation2]  }
   0x9   :  { %262 = vmatpush3.msra.mxu0 %v27_v4  ;;  %275 = vmatpush3.msra.mxu1 %v125_v10  ;;  %v233_v14 = vld [vmem:[%s400_s2] ss:$0 sm:$0xff]  ;;  %s222_s23 = sshll.u32 %s310_s3, 4  ;;  %s223_s23 = int_to_ptr.vmem [resolvable:$true] %s222_s23 }
   0xa   :  { %263 = vmatprep.subr.mxu0 %v26_v5  ;;  %276 = vmatprep.subr.mxu1 %v124_v11  ;;  %v236_v21 = vld [vmem:[%s402_s4] ss:$0 sm:$0xff]  ;;  %s288_s2 = scalar_lea.vmem %s223_s23, 256  ;;  %p293_p1 = scmp.lt.s32.totalorder %s223_s23, %s223_s23 }
   0xb   :  { %264 = vmatpush3.msra.mxu0 %v26_v5  ;;  %277 = vmatpush3.msra.mxu1 %v124_v11  ;;  %p289_p0 = scmp.ne.s32.totalorder %s223_s23, %s288_s2  ;;  %p294_p2 = scmp.lt.s32.totalorder %s288_s2, %s288_s2 }
   0xc   :  { %265 = vmatprep.subr.mxu0 %v25_v6  ;;  %278 = vmatprep.subr.mxu1 %v123_v12 }
   0xd   :  { %266 = vmatpush3.msra.mxu0 %v25_v6  ;;  %279 = vmatpush3.msra.mxu1 %v123_v12  ;;  %p295_p3 = por %p294_p2, %p293_p1 }
   0xe   :  { %267 = vmatprep.subr.mxu0 %v24_v7  ;;  %280 = vmatprep.subr.mxu1 %v122_v13 }
   0xf   :  { %268 = vmatpush3.msra.mxu0 %v24_v7  ;;  %281 = vmatpush3.msra.mxu1 %v122_v13  ;;  %p296_p4 = pnand %p295_p3, %p289_p0 }
  0x10   :  { %269 = vmatprep.subr.mxu0 %v23_v8 }
  0x11   :  { %270 = vmatpush3.msra.mxu0 %v23_v8 }
  0x12   :  { %272 = vmatmul.mubr.msk.f32.vlgmr.msra.gmra.mxu0 %vm38_vm0, %v22_v9 }
  0xd2   :  { %v273_v15 = vpop.f32.mrf.mxu0 }
  0xd3   :  { %v117_v16 = vadd.f32 %v273_v15, %v233_v14 }
  0xd4   :  { %v111_v17 = vpop.f32.mrf.mxu0 }
  0xd5   :  { %v112_v18 = vadd.f32 %v233_v14, %v111_v17  ;;  %v121_v20 = vmax.f32 %v117_v16, 0.0 }
  0xd7   :  { %v120_v19 = vmax.f32 %v112_v18, 0.0 }
  0xd9   :  { %282 = vmatprep.mubr.msk.f32.mxu1 %vm133_vm1, %v120_v19 }
  0xda   :  { %283 = vmatmul.mubr.msk.f32.vlgmr.msra.gmra.mxu1 %vm133_vm1, %v121_v20 }
 0x19a   :  { %v284_v22 = vpop.f32.mrf.mxu1 }
 0x19b   :  { %v212_v23 = vadd.f32 %v284_v22, %v236_v21 }
 0x19c   :  { %v206_v24 = vpop.f32.mrf.mxu1 }
 0x19d   :  { %216 = vst.msk [vmem:[#allocation2 + $0x8] sm:$0xff] %vm38_vm0, %v212_v23  ;;  %v207_v25 = vadd.f32 %v236_v21, %v206_v24 }
 0x19f   :  { %215 = vst.msk [vmem:[#allocation2] sm:$0xff] %vm38_vm0, %v207_v25 }
 0x1a0   :  { %299 = shalt.err (!%p296_p4)
}
 0x1a1   :  { %s311_s24 = smov 128   ;;  %s312_s4 = smov 8  }
 0x1a2   :  { %228 = dma.vmem_to_hbm [thread:$0]  %s223_s23, 256, %s403_s5, [#allocation3], %s311_s24, %s311_s24, %s312_s4  }
 0x1a3   :  { %308 = dma.done.wait [#allocation3], 256  }
 0x1a4   :  { %309 = vsyncadd [#allocation3], 4294967040 }
 0x1a5   :  { %232 = vsyncpa [#allocation3], 1 }

// kernel: tpu_custom_call.1
= control target key start
LH: loop header
LB: loop body
LE: loop exit
PB: predicated region body
PF: predicated region fallthrough
CT: control target
= control target key end

     0   :  { %vm38_vm0 = vcmask 523264   ;;  %s398_s0 = inlined_call_operand.vmem [shape: f32[16,64], index: 0, kind: input, shape index: {}]   ;;  %s399_s1 = inlined_call_operand.vmem [shape: f32[64,32], index: 1, kind: input, shape index: {}]   ;;  %s400_s2 = inlined_call_operand.vmem [shape: f32[1,32], index: 2, kind: input, shape index: {}]   ;;  %s401_s3 = inlined_call_operand.vmem [shape: f32[32,64], index: 3, kind: input, shape index: {}]   ;;  %s402_s4 = inlined_call_operand.vmem [shape: f32[1,64], index: 4, kind: input, shape index: {}]   ;;  %s403_s5 = inlined_call_operand.hbm [shape: f32[16,64], index: 5, kind: output, shape index: {}]  }
   0x1   :  { %v30_v0 = vld [vmem:[%s399_s1 + $0x38] sm:$0xff]  ;;  %v29_v1 = vld [vmem:[%s399_s1 + $0x30] sm:$0xff]  ;;  %v28_v2 = vld [vmem:[%s399_s1 + $0x28] sm:$0xff] }
   0x2   :  { %255 = vmatprep.subr.mxu0 %v30_v0  ;;  %v21_v3 = vld [vmem:[%s398_s0] sm:$0xff] }
   0x3   :  { %256 = vmatpush3.msra.mxu0 %v30_v0  ;;  %271 = vmatprep.mubr.msk.f32.mxu0 %vm38_vm0, %v21_v3 }
   0x4   :  { %257 = vmatprep.subr.mxu0 %v29_v1 }
   0x5   :  { %10 = vsyncpa [#allocation3], 0  ;;  %258 = vmatpush3.msra.mxu0 %v29_v1  ;;  %v27_v4 = vld [vmem:[%s399_s1 + $0x20] sm:$0xff]  ;;  %v26_v5 = vld [vmem:[%s399_s1 + $0x18] sm:$0xff]  ;;  %vm133_vm1 = vcmask 261120  }
   0x6   :  { %259 = vmatprep.subr.mxu0 %v28_v2  ;;  %v25_v6 = vld [vmem:[%s399_s1 + $0x10] sm:$0xff]  ;;  %v24_v7 = vld [vmem:[%s399_s1 + $0x8] sm:$0xff]  ;;  %v23_v8 = vld [vmem:[%s399_s1] sm:$0xff] }
   0x7   :  { %260 = vmatpush3.msra.mxu0 %v28_v2  ;;  %v22_v9 = vld [vmem:[%s398_s0 + $0x8] sm:$0xff]  ;;  %v125_v10 = vld [vmem:[%s401_s3 + $0x18] sm:$0xff]  ;;  %v124_v11 = vld [vmem:[%s401_s3 + $0x10] sm:$0xff] }
   0x8   :  { %261 = vmatprep.subr.mxu0 %v27_v4  ;;  %274 = vmatprep.subr.mxu1 %v125_v10  ;;  %v123_v12 = vld [vmem:[%s401_s3 + $0x8] sm:$0xff]  ;;  %v122_v13 = vld [vmem:[%s401_s3] sm:$0xff]  ;;  %s310_s3 = smov [#allocation2]  }
   0x9   :  { %262 = vmatpush3.msra.mxu0 %v27_v4  ;;  %275 = vmatpush3.msra.mxu1 %v125_v10  ;;  %v233_v14 = vld [vmem:[%s400_s2] ss:$0 sm:$0xff]  ;;  %s222_s23 = sshll.u32 %s310_s3, 4  ;;  %s223_s23 = int_to_ptr.vmem [resolvable:$true] %s222_s23 }
   0xa   :  { %263 = vmatprep.subr.mxu0 %v26_v5  ;;  %276 = vmatprep.subr.mxu1 %v124_v11  ;;  %v236_v21 = vld [vmem:[%s402_s4] ss:$0 sm:$0xff]  ;;  %s288_s2 = scalar_lea.vmem %s223_s23, 256  ;;  %p293_p1 = scmp.lt.s32.totalorder %s223_s23, %s223_s23 }
   0xb   :  { %264 = vmatpush3.msra.mxu0 %v26_v5  ;;  %277 = vmatpush3.msra.mxu1 %v124_v11  ;;  %p289_p0 = scmp.ne.s32.totalorder %s223_s23, %s288_s2  ;;  %p294_p2 = scmp.lt.s32.totalorder %s288_s2, %s288_s2 }
   0xc   :  { %265 = vmatprep.subr.mxu0 %v25_v6  ;;  %278 = vmatprep.subr.mxu1 %v123_v12 }
   0xd   :  { %266 = vmatpush3.msra.mxu0 %v25_v6  ;;  %279 = vmatpush3.msra.mxu1 %v123_v12  ;;  %p295_p3 = por %p294_p2, %p293_p1 }
   0xe   :  { %267 = vmatprep.subr.mxu0 %v24_v7  ;;  %280 = vmatprep.subr.mxu1 %v122_v13 }
   0xf   :  { %268 = vmatpush3.msra.mxu0 %v24_v7  ;;  %281 = vmatpush3.msra.mxu1 %v122_v13  ;;  %p296_p4 = pnand %p295_p3, %p289_p0 }
  0x10   :  { %269 = vmatprep.subr.mxu0 %v23_v8 }
  0x11   :  { %270 = vmatpush3.msra.mxu0 %v23_v8 }
  0x12   :  { %272 = vmatmul.mubr.msk.f32.vlgmr.msra.gmra.mxu0 %vm38_vm0, %v22_v9 }
  0xd2   :  { %v273_v15 = vpop.f32.mrf.mxu0 }
  0xd3   :  { %v117_v16 = vadd.f32 %v273_v15, %v233_v14 }
  0xd4   :  { %v111_v17 = vpop.f32.mrf.mxu0 }
  0xd5   :  { %v112_v18 = vadd.f32 %v233_v14, %v111_v17  ;;  %v121_v20 = vmax.f32 %v117_v16, 0.0 }
  0xd7   :  { %v120_v19 = vmax.f32 %v112_v18, 0.0 }
  0xd9   :  { %282 = vmatprep.mubr.msk.f32.mxu1 %vm133_vm1, %v120_v19 }
  0xda   :  { %283 = vmatmul.mubr.msk.f32.vlgmr.msra.gmra.mxu1 %vm133_vm1, %v121_v20 }
 0x19a   :  { %v284_v22 = vpop.f32.mrf.mxu1 }
 0x19b   :  { %v212_v23 = vadd.f32 %v284_v22, %v236_v21 }
 0x19c   :  { %v206_v24 = vpop.f32.mrf.mxu1 }
 0x19d   :  { %216 = vst.msk [vmem:[#allocation2 + $0x8] sm:$0xff] %vm38_vm0, %v212_v23  ;;  %v207_v25 = vadd.f32 %v236_v21, %v206_v24 }
 0x19f   :  { %215 = vst.msk [vmem:[#allocation2] sm:$0xff] %vm38_vm0, %v207_v25 }
 0x1a0   :  { %299 = shalt.err (!%p296_p4)
}
 0x1a1   :  { %s311_s24 = smov 128   ;;  %s312_s4 = smov 8  }
 0x1a2   :  { %228 = dma.vmem_to_hbm [thread:$0]  %s223_s23, 256, %s403_s5, [#allocation3], %s311_s24, %s311_s24, %s312_s4  }
 0x1a3   :  { %308 = dma.done.wait [#allocation3], 256  }
 0x1a4   :  { %309 = vsyncadd [#allocation3], 4294967040 }
 0x1a5   :  { %232 = vsyncpa [#allocation3], 1 }

</bundles_post_ra>
